<compile_context>
chip_gen: v7x
topology: tpu7x:2x2x1
jax: 0.10.0
libtpu: 0.0.40
codegen_flags: <defaults>
</compile_context>

<pallas_src>
import jax
import jax.numpy as jnp
from jax.experimental import pallas as pl
from jax.experimental.pallas import tpu as pltpu

_LANE = 128   # vreg lane width
_HID = 5      # folded hidden width (fc2 outputs)


def _mlp_kernel(p_ref, x_ref, o_ref):
    """p_ref: (21,) f32 in SMEM; x_ref: (2, TR, 128) VMEM; o_ref: (TR, 128) VMEM.

    Packed parameter layout:
      p[0:5]   = W12[0, :]  (input-feature-0 coefficients of the 5 hidden units)
      p[5:10]  = W12[1, :]  (input-feature-1 coefficients)
      p[10:15] = b12
      p[15:20] = W3[:, 0]
      p[20]    = b3
    """
    x0 = x_ref[0]                      # (TR, 128) feature 0 over the batch tile
    x1 = x_ref[1]                      # (TR, 128) feature 1
    acc = jnp.zeros_like(x0)
    for j in range(_HID):              # fully unrolled: 5 hidden units, VPU FMAs
        h = p_ref[j] * x0 + p_ref[_HID + j] * x1 + p_ref[2 * _HID + j]
        acc = acc + p_ref[3 * _HID + j] * jnp.maximum(h, 0.0)
    o_ref[...] = (acc + p_ref[4 * _HID]).astype(o_ref.dtype)


@jax.jit
def net_forward(x, params):
    """x: (B, 2) float32. params: w1,b1,w2,b2,w3,b3; weights stored (in, out)."""
    w1, b1 = params["w1"], params["b1"]
    w2, b2 = params["w2"], params["b2"]
    w3, b3 = params["w3"], params["b3"]
    B = x.shape[0]

    # Fold fc1 into fc2 (no nonlinearity between them in the reference forward).
    w12 = w1 @ w2                       # (2, 5)
    b12 = b1 @ w2 + b2                  # (1, 5)
    packed = jnp.concatenate(
        [w12[0], w12[1], b12[0], w3[:, 0], b3[0]]).astype(jnp.float32)  # (21,)

    # Batch -> (sublane, lane) layout: (B, 2) -> (2, Rp, 128), zero-padded.
    r = pl.cdiv(B, _LANE)               # 128-wide batch rows
    r8 = pl.cdiv(r, 8) * 8              # round rows to sublane multiple
    tr = min(64, r8)                    # tile rows (64*128 batch elems / step)
    rp = pl.cdiv(r8, tr) * tr
    bp = rp * _LANE
    x_pad = jnp.pad(x.astype(jnp.float32), ((0, bp - B), (0, 0)))  # (Bp, 2)
    x_t = x_pad.T.reshape(2, rp, _LANE)                            # (2, Rp, 128)

    out = pl.pallas_call(
        _mlp_kernel,
        out_shape=jax.ShapeDtypeStruct((rp, _LANE), jnp.float32),
        grid=(rp // tr,),
        in_specs=[
            pl.BlockSpec(memory_space=pltpu.MemorySpace.SMEM),   # packed params
            pl.BlockSpec((2, tr, _LANE), lambda i: (0, i, 0)),   # x batch tile
        ],
        out_specs=pl.BlockSpec((tr, _LANE), lambda i: (i, 0)),
        compiler_params=pltpu.CompilerParams(
            dimension_semantics=("parallel",)),
    )(packed, x_t)

    return out.reshape(bp)[:B].reshape(B, 1)


def init_params(key):
    """Deterministic init mimicking PyTorch Linear's U(-1/sqrt(fan_in), ...)."""
    def linear(key, fan_in, fan_out):
        kw, kb = jax.random.split(key)
        bound = 1.0 / jnp.sqrt(fan_in)
        # stored as (in, out): equivalent to PyTorch's W.T
        w = jax.random.uniform(kw, (fan_in, fan_out), jnp.float32, -bound, bound)
        b = jax.random.uniform(kb, (1, fan_out), jnp.float32, -bound, bound)
        return w, b

    k1, k2, k3 = jax.random.split(key, 3)
    w1, b1 = linear(k1, 2, 10)
    w2, b2 = linear(k2, 10, 5)
    w3, b3 = linear(k3, 5, 1)
    return {"w1": w1, "b1": b1, "w2": w2, "b2": b2, "w3": w3, "b3": b3}


def _reference(x, p):
    h1 = x @ p["w1"] + p["b1"]
    h2 = jnp.maximum(h1 @ p["w2"] + p["b2"], 0.0)
    return h2 @ p["w3"] + p["b3"]


if __name__ == "__main__":
    key = jax.random.PRNGKey(0)
    kx, kp = jax.random.split(key)

    B = 8  # small batch, 2 input features (matches nn.Linear(2, 10))
    x = jax.random.normal(kx, (B, 2), jnp.float32)
    params = init_params(kp)

    out = net_forward(x, params)
    out = jax.block_until_ready(out)

    ref = _reference(x, params)
    assert out.shape == (B, 1), out.shape
    # Folding W1@W2 reassociates a length-2 dot; tolerance covers f32 rounding.
    assert jnp.allclose(out, ref, atol=1e-5, rtol=1e-4), (out, ref)

    print("KERNEL_OK")
</pallas_src>

<mosaic_0001>
module attributes {stable_mosaic.version = 11 : i64} {
  func.func @_mlp_kernel(%arg0: i32, %arg1: memref<21xf32, #tpu.memory_space<smem>>, %arg2: memref<2x8x128xf32, #tpu.memory_space<vmem>>, %arg3: memref<8x128xf32, #tpu.memory_space<vmem>>) attributes {dimension_semantics = [#tpu.dimension_semantics<parallel>], iteration_bounds = array<i64: 1>, scalar_prefetch = 0 : i64, scratch_operands = 0 : i64, tpu.core_type = #tpu.core_type<tc>, window_params = [{transform_indices = @transform_0, window_bounds = array<i64: 21>}, {transform_indices = @transform_1, window_bounds = array<i64: 2, 8, 128>}, {transform_indices = @transform_2, window_bounds = array<i64: 8, 128>}]} {
    %c0 = arith.constant 0 : index
    %c0_0 = arith.constant 0 : index
    %c0_1 = arith.constant 0 : index
    %0 = vector.load %arg2[%c0, %c0_0, %c0_1] : memref<2x8x128xf32, #tpu.memory_space<vmem>>, vector<1x8x128xf32>
    %1 = vector.shape_cast %0 : vector<1x8x128xf32> to vector<8x128xf32>
    %c1 = arith.constant 1 : index
    %c0_2 = arith.constant 0 : index
    %c0_3 = arith.constant 0 : index
    %2 = vector.load %arg2[%c1, %c0_2, %c0_3] : memref<2x8x128xf32, #tpu.memory_space<vmem>>, vector<1x8x128xf32>
    %3 = vector.shape_cast %2 : vector<1x8x128xf32> to vector<8x128xf32>
    %cst = arith.constant 0.000000e+00 : f32
    %4 = vector.broadcast %cst : f32 to vector<8x128xf32>
    %c0_4 = arith.constant 0 : index
    %5 = memref.load %arg1[%c0_4] : memref<21xf32, #tpu.memory_space<smem>>
    %6 = vector.broadcast %5 : f32 to vector<8x128xf32>
    %7 = arith.mulf %6, %1 : vector<8x128xf32>
    %c5 = arith.constant 5 : index
    %8 = memref.load %arg1[%c5] : memref<21xf32, #tpu.memory_space<smem>>
    %9 = vector.broadcast %8 : f32 to vector<8x128xf32>
    %10 = arith.mulf %9, %3 : vector<8x128xf32>
    %11 = arith.addf %7, %10 : vector<8x128xf32>
    %c10 = arith.constant 10 : index
    %12 = memref.load %arg1[%c10] : memref<21xf32, #tpu.memory_space<smem>>
    %13 = vector.broadcast %12 : f32 to vector<8x128xf32>
    %14 = arith.addf %11, %13 : vector<8x128xf32>
    %c15 = arith.constant 15 : index
    %15 = memref.load %arg1[%c15] : memref<21xf32, #tpu.memory_space<smem>>
    %cst_5 = arith.constant 0.000000e+00 : f32
    %16 = vector.broadcast %cst_5 : f32 to vector<8x128xf32>
    %17 = arith.maximumf %14, %16 : vector<8x128xf32>
    %18 = vector.broadcast %15 : f32 to vector<8x128xf32>
    %19 = arith.mulf %18, %17 : vector<8x128xf32>
    %20 = arith.addf %4, %19 : vector<8x128xf32>
    %c1_6 = arith.constant 1 : index
    %21 = memref.load %arg1[%c1_6] : memref<21xf32, #tpu.memory_space<smem>>
    %22 = vector.broadcast %21 : f32 to vector<8x128xf32>
    %23 = arith.mulf %22, %1 : vector<8x128xf32>
    %c6 = arith.constant 6 : index
    %24 = memref.load %arg1[%c6] : memref<21xf32, #tpu.memory_space<smem>>
    %25 = vector.broadcast %24 : f32 to vector<8x128xf32>
    %26 = arith.mulf %25, %3 : vector<8x128xf32>
    %27 = arith.addf %23, %26 : vector<8x128xf32>
    %c11 = arith.constant 11 : index
    %28 = memref.load %arg1[%c11] : memref<21xf32, #tpu.memory_space<smem>>
    %29 = vector.broadcast %28 : f32 to vector<8x128xf32>
    %30 = arith.addf %27, %29 : vector<8x128xf32>
    %c16 = arith.constant 16 : index
    %31 = memref.load %arg1[%c16] : memref<21xf32, #tpu.memory_space<smem>>
    %cst_7 = arith.constant 0.000000e+00 : f32
    %32 = vector.broadcast %cst_7 : f32 to vector<8x128xf32>
    %33 = arith.maximumf %30, %32 : vector<8x128xf32>
    %34 = vector.broadcast %31 : f32 to vector<8x128xf32>
    %35 = arith.mulf %34, %33 : vector<8x128xf32>
    %36 = arith.addf %20, %35 : vector<8x128xf32>
    %c2 = arith.constant 2 : index
    %37 = memref.load %arg1[%c2] : memref<21xf32, #tpu.memory_space<smem>>
    %38 = vector.broadcast %37 : f32 to vector<8x128xf32>
    %39 = arith.mulf %38, %1 : vector<8x128xf32>
    %c7 = arith.constant 7 : index
    %40 = memref.load %arg1[%c7] : memref<21xf32, #tpu.memory_space<smem>>
    %41 = vector.broadcast %40 : f32 to vector<8x128xf32>
    %42 = arith.mulf %41, %3 : vector<8x128xf32>
    %43 = arith.addf %39, %42 : vector<8x128xf32>
    %c12 = arith.constant 12 : index
    %44 = memref.load %arg1[%c12] : memref<21xf32, #tpu.memory_space<smem>>
    %45 = vector.broadcast %44 : f32 to vector<8x128xf32>
    %46 = arith.addf %43, %45 : vector<8x128xf32>
    %c17 = arith.constant 17 : index
    %47 = memref.load %arg1[%c17] : memref<21xf32, #tpu.memory_space<smem>>
    %cst_8 = arith.constant 0.000000e+00 : f32
    %48 = vector.broadcast %cst_8 : f32 to vector<8x128xf32>
    %49 = arith.maximumf %46, %48 : vector<8x128xf32>
    %50 = vector.broadcast %47 : f32 to vector<8x128xf32>
    %51 = arith.mulf %50, %49 : vector<8x128xf32>
    %52 = arith.addf %36, %51 : vector<8x128xf32>
    %c3 = arith.constant 3 : index
    %53 = memref.load %arg1[%c3] : memref<21xf32, #tpu.memory_space<smem>>
    %54 = vector.broadcast %53 : f32 to vector<8x128xf32>
    %55 = arith.mulf %54, %1 : vector<8x128xf32>
    %c8 = arith.constant 8 : index
    %56 = memref.load %arg1[%c8] : memref<21xf32, #tpu.memory_space<smem>>
    %57 = vector.broadcast %56 : f32 to vector<8x128xf32>
    %58 = arith.mulf %57, %3 : vector<8x128xf32>
    %59 = arith.addf %55, %58 : vector<8x128xf32>
    %c13 = arith.constant 13 : index
    %60 = memref.load %arg1[%c13] : memref<21xf32, #tpu.memory_space<smem>>
    %61 = vector.broadcast %60 : f32 to vector<8x128xf32>
    %62 = arith.addf %59, %61 : vector<8x128xf32>
    %c18 = arith.constant 18 : index
    %63 = memref.load %arg1[%c18] : memref<21xf32, #tpu.memory_space<smem>>
    %cst_9 = arith.constant 0.000000e+00 : f32
    %64 = vector.broadcast %cst_9 : f32 to vector<8x128xf32>
    %65 = arith.maximumf %62, %64 : vector<8x128xf32>
    %66 = vector.broadcast %63 : f32 to vector<8x128xf32>
    %67 = arith.mulf %66, %65 : vector<8x128xf32>
    %68 = arith.addf %52, %67 : vector<8x128xf32>
    %c4 = arith.constant 4 : index
    %69 = memref.load %arg1[%c4] : memref<21xf32, #tpu.memory_space<smem>>
    %70 = vector.broadcast %69 : f32 to vector<8x128xf32>
    %71 = arith.mulf %70, %1 : vector<8x128xf32>
    %c9 = arith.constant 9 : index
    %72 = memref.load %arg1[%c9] : memref<21xf32, #tpu.memory_space<smem>>
    %73 = vector.broadcast %72 : f32 to vector<8x128xf32>
    %74 = arith.mulf %73, %3 : vector<8x128xf32>
    %75 = arith.addf %71, %74 : vector<8x128xf32>
    %c14 = arith.constant 14 : index
    %76 = memref.load %arg1[%c14] : memref<21xf32, #tpu.memory_space<smem>>
    %77 = vector.broadcast %76 : f32 to vector<8x128xf32>
    %78 = arith.addf %75, %77 : vector<8x128xf32>
    %c19 = arith.constant 19 : index
    %79 = memref.load %arg1[%c19] : memref<21xf32, #tpu.memory_space<smem>>
    %cst_10 = arith.constant 0.000000e+00 : f32
    %80 = vector.broadcast %cst_10 : f32 to vector<8x128xf32>
    %81 = arith.maximumf %78, %80 : vector<8x128xf32>
    %82 = vector.broadcast %79 : f32 to vector<8x128xf32>
    %83 = arith.mulf %82, %81 : vector<8x128xf32>
    %84 = arith.addf %68, %83 : vector<8x128xf32>
    %c20 = arith.constant 20 : index
    %85 = memref.load %arg1[%c20] : memref<21xf32, #tpu.memory_space<smem>>
    %86 = vector.broadcast %85 : f32 to vector<8x128xf32>
    %87 = arith.addf %84, %86 : vector<8x128xf32>
    %c0_11 = arith.constant 0 : index
    %c0_12 = arith.constant 0 : index
    %88 = vector.load %arg3[%c0_11, %c0_12] : memref<8x128xf32, #tpu.memory_space<vmem>>, vector<8x128xf32>
    tpu.vector_store %arg3[%c0_11, %c0_12], %87 {strides = array<i32>} : memref<8x128xf32, #tpu.memory_space<vmem>>, vector<8x128xf32>,
    return
  }
  func.func @transform_0(%arg0: i32) -> i32 {
    %c0_i32 = arith.constant 0 : i32
    %c0_i32_0 = arith.constant 0 : i32
    return %c0_i32 : i32
  }
  func.func @transform_1(%arg0: i32) -> (i32, i32, i32) {
    %c0_i32 = arith.constant 0 : i32
    %c0_i32_0 = arith.constant 0 : i32
    %c0_i32_1 = arith.constant 0 : i32
    return %c0_i32, %arg0, %c0_i32_0 : i32, i32, i32
  }
  func.func @transform_2(%arg0: i32) -> (i32, i32) {
    %c0_i32 = arith.constant 0 : i32
    %c0_i32_0 = arith.constant 0 : i32
    return %arg0, %c0_i32 : i32, i32
  }
}

</mosaic_0001>

<bundles_post_ra>
// kernel: net_forward.1
= control target key start
LH: loop header
LB: loop body
LE: loop exit
PB: predicated region body
PF: predicated region fallthrough
CT: control target
= control target key end

     0   :  { %7 = vsyncpa [#allocation3], 0  ;;  %s208_s0 = inlined_call_operand.vmem [shape: f32[21], index: 0, kind: input, shape index: {}]   ;;  %s209_s1 = inlined_call_operand.vmem [shape: f32[2,8,128], index: 1, kind: input, shape index: {}]   ;;  %s210_s2 = inlined_call_operand.vmem [shape: f32[8,128], index: 2, kind: output, shape index: {}]  }
   0x1   :  { %s14_s11 = sshll.u32 %s208_s0, 4  ;;  %s15_s11 = int_to_ptr.vmem [resolvable:$true] %s14_s11 }
   0x2   :  { %s133_s12 = scalar_lea.vmem %s15_s11, 16  ;;  %p138_p1 = scmp.lt.s32.totalorder %s15_s11, %s15_s11 }
   0x3   :  { %p134_p0 = scmp.ne.s32.totalorder %s15_s11, %s133_s12  ;;  %p139_p2 = scmp.lt.s32.totalorder %s133_s12, %s133_s12 }
   0x5   :  { %p140_p3 = por %p139_p2, %p138_p1 }
   0x7   :  { %p141_p4 = pnand %p140_p3, %p134_p0 }
   0x9   :  { %144 = shalt.err (!%p141_p4)
}
   0xa   :  { %s147_s13 = smov [#allocation2]  }
   0xb   :  { %17 = dma.vmem_to_smem %s15_s11, 16, %s147_s13, [#allocation3]  }
   0xc   :  { %145 = dma.done.wait [#allocation3], 16  }
   0xd   :  { %146 = vsyncadd [#allocation3], 4294967280 }
   0xe   :  { %23 = sfence }
   0xf   :  { %s27_s14 = sld [smem:[#allocation2]]  ;;  %s112_s15 = sld [smem:[#allocation2 + $0x5]]  ;;  %v24_v0 = vld [vmem:[%s209_s1] sm:$0xff]  ;;  %v111_v1 = vld [vmem:[%s209_s1 + $0x8] sm:$0xff] }
  0x10   :  { %s166_s16 = sld [smem:[#allocation2 + $0xa]]  ;;  %s115_s17 = sld [smem:[#allocation2 + $0x1]] }
  0x11   :  { %s116_s18 = sld [smem:[#allocation2 + $0x6]]  ;;  %s168_s0 = sld [smem:[#allocation2 + $0xf]] }
  0x12   :  { %s170_s19 = sld [smem:[#allocation2 + $0xb]]  ;;  %s119_s24 = sld [smem:[#allocation2 + $0x2]] }
  0x13   :  { %s120_s25 = sld [smem:[#allocation2 + $0x7]]  ;;  %s178_s26 = sld [smem:[#allocation2 + $0x10]] }
  0x14   :  { %s180_s27 = sld [smem:[#allocation2 + $0xc]]  ;;  %s123_s28 = sld [smem:[#allocation2 + $0x3]] }
  0x15   :  { %v28_v2 = vstv %s27_s14  ;;  %v31_v3 = vstv %s112_s15  ;;  %s182_s29 = sld [smem:[#allocation2 + $0x8]]  ;;  %s184_s30 = sld [smem:[#allocation2 + $0x11]] }
  0x16   :  { %v29_v4 = vmul.f32 %v28_v2, %v24_v0  ;;  %v32_v5 = vmul.f32 %v111_v1, %v31_v3  ;;  %s186_s3 = sld [smem:[#allocation2 + $0xd]]  ;;  %v35_v6 = vstv %s166_s16  ;;  %v43_v7 = vstv %s115_s17  ;;  %s127_s1 = sld [smem:[#allocation2 + $0x4]] }
  0x17   :  { %v46_v8 = vstv %s116_s18  ;;  %s189_s4 = sld [smem:[#allocation2 + $0x9]]  ;;  %v44_v10 = vmul.f32 %v43_v7, %v24_v0  ;;  %s192_s5 = sld [smem:[#allocation2 + $0xe]]  ;;  %v39_v19 = vstv %s168_s0 }
  0x18   :  { %v33_v9 = vadd.f32 %v32_v5, %v29_v4  ;;  %v47_v11 = vmul.f32 %v111_v1, %v46_v8  ;;  %v50_v12 = vstv %s170_s19  ;;  %v58_v13 = vstv %s119_s24  ;;  %s194_s6 = sld [smem:[#allocation2 + $0x12]]  ;;  %s130_s7 = sld [smem:[#allocation2 + $0x13]] }
  0x19   :  { %v61_v14 = vstv %s120_s25  ;;  %v59_v17 = vmul.f32 %v58_v13, %v24_v0  ;;  %v54_v27 = vstv %s178_s26  ;;  %s131_s8 = sld [smem:[#allocation2 + $0x14]] }
  0x1a   :  { %v36_v15 = vadd.f32 %v35_v6, %v33_v9  ;;  %v48_v16 = vadd.f32 %v47_v11, %v44_v10  ;;  %v62_v18 = vmul.f32 %v111_v1, %v61_v14  ;;  %v65_v20 = vstv %s180_s27 }
  0x1b   :  { %v73_v21 = vstv %s123_s28  ;;  %v76_v22 = vstv %s182_s29  ;;  %v69_v35 = vstv %s184_s30 }
  0x1c   :  { %v38_v23 = vmax.f32 %v36_v15, 0.0  ;;  %v51_v24 = vadd.f32 %v50_v12, %v48_v16  ;;  %v63_v25 = vadd.f32 %v62_v18, %v59_v17  ;;  %v74_v26 = vmul.f32 %v73_v21, %v24_v0 }
  0x1d   :  { %v77_v28 = vmul.f32 %v111_v1, %v76_v22  ;;  %v80_v29 = vstv %s186_s3  ;;  %v88_v30 = vstv %s127_s1  ;;  %v91_v37 = vstv %s189_s4 }
  0x1e   :  { %v40_v31 = vmul.f32 %v39_v19, %v38_v23  ;;  %v53_v32 = vmax.f32 %v51_v24, 0.0  ;;  %v66_v33 = vadd.f32 %v65_v20, %v63_v25  ;;  %v89_v34 = vmul.f32 %v88_v30, %v24_v0 }
  0x1f   :  { %v78_v36 = vadd.f32 %v77_v28, %v74_v26  ;;  %v92_v40 = vmul.f32 %v111_v1, %v91_v37  ;;  %v95_v42 = vstv %s192_s5  ;;  %v84_v45 = vstv %s194_s6 }
  0x20   :  { %v55_v38 = vmul.f32 %v54_v27, %v53_v32  ;;  %v68_v39 = vmax.f32 %v66_v33, 0.0  ;;  %v99_v51 = vstv %s130_s7  ;;  %v103_v55 = vstv %s131_s8 }
  0x21   :  { %v81_v41 = vadd.f32 %v80_v29, %v78_v36  ;;  %v93_v46 = vadd.f32 %v92_v40, %v89_v34 }
  0x22   :  { %v56_v43 = vadd.f32 %v55_v38, %v40_v31  ;;  %v70_v44 = vmul.f32 %v69_v35, %v68_v39 }
  0x23   :  { %v83_v47 = vmax.f32 %v81_v41, 0.0  ;;  %v96_v49 = vadd.f32 %v95_v42, %v93_v46 }
  0x24   :  { %v71_v48 = vadd.f32 %v70_v44, %v56_v43 }
  0x25   :  { %v85_v50 = vmul.f32 %v84_v45, %v83_v47  ;;  %v98_v52 = vmax.f32 %v96_v49, 0.0 }
  0x27   :  { %v86_v53 = vadd.f32 %v85_v50, %v71_v48  ;;  %v100_v54 = vmul.f32 %v99_v51, %v98_v52 }
  0x29   :  { %v101_v56 = vadd.f32 %v100_v54, %v86_v53 }
  0x2b   :  { %v104_v57 = vadd.f32 %v103_v55, %v101_v56 }
  0x2d   :  { %105 = vst [vmem:[%s210_s2] sm:$0xff] %v104_v57 }
  0x2e   :  { %110 = vsyncpa [#allocation3], 1 }

</bundles_post_ra>
